<compile_context>
chip_gen: v7x
topology: tpu7x:2x2x1
jax: 0.10.0
libtpu: 0.0.40
codegen_flags: <defaults>
</compile_context>

<pallas_src>
import jax
import jax.numpy as jnp
from jax.experimental import pallas as pl
from jax.experimental.pallas import tpu as pltpu

BN_EPS = 1e-5


# --------------------------------------------------------------------------
# Kernels
# --------------------------------------------------------------------------
def pool_embed_kernel(feat_ref, w_ref, out_ref):
    """Grid: (B // tile_b ["parallel"], C // tile_c ["arbitrary", innermost]).

    feat_ref: [tile_b, HW, tile_c] bf16  channels-last feature tile
    w_ref:    [tile_c, E_pad]      bf16  embed weight, pre-scaled by 1/(H*W)
    out_ref:  [tile_b, E_pad]      f32   resident accumulator (same block
                                         across the channel reduction axis)
    """
    k = pl.program_id(1)

    @pl.when(k == 0)
    def _init():
        out_ref[...] = jnp.zeros_like(out_ref)

    # AdaptiveAvgPool2d((1,1)) + flatten: spatial SUM (1/(H*W) folded into the
    # weight).  Channels sit on lanes -> cheap sublane reduction with an f32
    # accumulator; no explicit f32 copy of the whole bf16 tile.
    pooled = jnp.sum(feat_ref[...], axis=1, dtype=jnp.float32)   # [tile_b, tile_c]

    # Partial Linear over this channel tile: native bf16 x bf16 MXU matmul,
    # f32 accumulation into the resident output block.
    out_ref[...] += jnp.dot(pooled.astype(jnp.bfloat16), w_ref[...],
                            preferred_element_type=jnp.float32)


def batchnorm_kernel(emb_ref, gamma_ref, beta_ref, out_ref):
    """BatchNorm1d epilogue, training-mode batch statistics (biased variance).

    Needs full-batch statistics, so it runs as a separate single-block call on
    the small [B, E_pad] embedding (this is what allows tiling B in the main
    kernel).  Zero-padded E columns give var = 0 -> rsqrt(eps) (finite); their
    output is exactly 0 because gamma/beta are zero-padded, and they are
    sliced off by the wrapper.
    """
    emb = emb_ref[...]                                      # [B, E_pad] f32
    mean = jnp.mean(emb, axis=0, keepdims=True)             # [1, E_pad]
    diff = emb - mean
    var = jnp.mean(diff * diff, axis=0, keepdims=True)
    inv_std = jax.lax.rsqrt(var + BN_EPS)
    out_ref[...] = diff * inv_std * gamma_ref[...] + beta_ref[...]


# --------------------------------------------------------------------------
# Generation-aware tiling
# --------------------------------------------------------------------------
def _vmem_capacity_bytes():
    """Physical VMEM per TensorCore: 64 MiB on v7x, 128 MiB on v5e/v6e."""
    try:
        cap = getattr(pltpu.get_tpu_info(), "vmem_capacity_bytes", None)
        if cap:
            return int(cap)
    except Exception:
        pass
    return 64 << 20   # conservative fallback (v7x)


def _tile_candidates(n, unit):
    """Divisors of n that are multiples of `unit` (descending), plus n itself."""
    cands = {n}
    t = (n // unit) * unit
    while t >= unit:
        if n % t == 0:
            cands.add(t)
        t -= unit
    return sorted(cands, reverse=True)


def _footprint_bytes(tile_b, tile_c, hw, e_pad, feat_itemsize):
    feat_buf = 2 * tile_b * hw * tile_c * feat_itemsize   # double-buffered feature tiles
    feat_f32 = tile_b * hw * tile_c * 4                   # possible f32 temp in the pool sum
    w_buf = 2 * tile_c * e_pad * 2                        # double-buffered bf16 weight tiles
    out_buf = 2 * tile_b * e_pad * 4                      # resident f32 accumulator blocks
    return feat_buf + feat_f32 + w_buf + out_buf


def _choose_tiling(b, c, hw, e_pad, feat_itemsize, tile_b, tile_c):
    """Pick (tile_b, tile_c, vmem_limit_bytes) from the device's VMEM capacity."""
    cap = _vmem_capacity_bytes()
    budget = max(min(cap - (16 << 20), 100 << 20), 8 << 20)

    if tile_c is None or tile_b is None:
        c_cands = _tile_candidates(c, 128)
        b_cands = _tile_candidates(b, 8)
        if b >= 16:   # prefer >=2 batch tiles so the "parallel" axis has work
            b_cands = [t for t in b_cands if t <= b // 2] or b_cands
        chosen = None
        for tc in (c_cands if tile_c is None else [tile_c]):
            for tb in (b_cands if tile_b is None else [tile_b]):
                if _footprint_bytes(tb, tc, hw, e_pad, feat_itemsize) <= budget:
                    chosen = (tb, tc)
                    break
            if chosen is not None:
                break
        if chosen is None:   # tiny-tile fallback
            chosen = (tile_b or min(b, 8), tile_c or min(c, 128))
        tile_b, tile_c = chosen

    assert b % tile_b == 0 and (tile_b % 8 == 0 or tile_b == b), (b, tile_b)
    assert c % tile_c == 0 and (tile_c % 128 == 0 or tile_c == c), (c, tile_c)

    fp = _footprint_bytes(tile_b, tile_c, hw, e_pad, feat_itemsize)
    vmem_limit = int(max(16 << 20, min(cap - (4 << 20), fp + (8 << 20))))
    return tile_b, tile_c, vmem_limit


# --------------------------------------------------------------------------
# Wrapper
# --------------------------------------------------------------------------
def encoder_cnn_forward(feat_nhwc, w_embed, b_embed, gamma, beta, *,
                        tile_b=None, tile_c=None):
    """EncoderCNN forward, downstream of the frozen conv stack.

    feat_nhwc: [B, H, W, C] channels-last feature map (bf16 preferred) — the
               natural TPU conv-output layout; no wrapper-side relayout/cast.
    w_embed:   [C, E]  Linear weight (nn.Linear weight, transposed)
    b_embed:   [E]     Linear bias — dropped: cancels exactly under
               training-mode (batch-statistics) BatchNorm1d.
    gamma, beta: [E]   BatchNorm1d affine parameters.
    Returns [B, E] float32.
    """
    B, H, W, C = feat_nhwc.shape
    HW = H * W
    E = w_embed.shape[1]
    del b_embed   # exact cancellation under training-mode BN only

    # Free reshape (merges the adjacent, contiguous H and W dims).
    feat = feat_nhwc.reshape(B, HW, C)

    # Lane-dense embedding width; bf16 weight pre-scaled by 1/(H*W).
    E_pad = max(128, ((E + 127) // 128) * 128)
    w_scaled = (w_embed.astype(jnp.float32) / jnp.float32(HW)).astype(jnp.bfloat16)
    w_p = jnp.zeros((C, E_pad), jnp.bfloat16).at[:, :E].set(w_scaled)
    g_p = jnp.zeros((1, E_pad), jnp.float32).at[0, :E].set(gamma.astype(jnp.float32))
    b_p = jnp.zeros((1, E_pad), jnp.float32).at[0, :E].set(beta.astype(jnp.float32))

    tile_b, tile_c, vmem_limit = _choose_tiling(
        B, C, HW, E_pad, jnp.dtype(feat.dtype).itemsize, tile_b, tile_c)
    grid = (B // tile_b, C // tile_c)

    # Pool + Linear partial sums: batch-parallel, channel-reduction grid.
    emb_pad = pl.pallas_call(
        pool_embed_kernel,
        out_shape=jax.ShapeDtypeStruct((B, E_pad), jnp.float32),
        grid_spec=pltpu.PrefetchScalarGridSpec(
            num_scalar_prefetch=0,
            grid=grid,
            in_specs=[
                pl.BlockSpec((tile_b, HW, tile_c), lambda b, k: (b, 0, k)),
                pl.BlockSpec((tile_c, E_pad), lambda b, k: (k, 0)),
            ],
            out_specs=pl.BlockSpec((tile_b, E_pad), lambda b, k: (b, 0)),
        ),
        compiler_params=pltpu.CompilerParams(
            dimension_semantics=("parallel", "arbitrary"),
            vmem_limit_bytes=vmem_limit,
        ),
    )(feat, w_p)

    # BatchNorm1d epilogue (needs the full batch) — tiny single-block call.
    out_pad = pl.pallas_call(
        batchnorm_kernel,
        out_shape=jax.ShapeDtypeStruct((B, E_pad), jnp.float32),
    )(emb_pad, g_p, b_p)

    return out_pad[:, :E]


# --------------------------------------------------------------------------
# Pure-JAX reference
# --------------------------------------------------------------------------
def reference_forward(feat_nhwc, w_embed, b_embed, gamma, beta,
                      match_kernel_quantization=False):
    """mean-pool -> Linear (+bias) -> training-mode BatchNorm1d.

    With match_kernel_quantization=True the Linear operands are rounded to
    bf16 the same way the kernel does (1/(H*W) folded into the weight), so the
    comparison tolerance can stay tight; the bias is still applied here to
    verify that it cancels under batch-statistics BN.
    """
    HW = feat_nhwc.shape[1] * feat_nhwc.shape[2]
    feat = feat_nhwc.astype(jnp.float32)
    if match_kernel_quantization:
        pooled = jnp.sum(feat, axis=(1, 2))
        pooled = pooled.astype(jnp.bfloat16).astype(jnp.float32)
        w = (w_embed.astype(jnp.float32) / jnp.float32(HW)).astype(jnp.bfloat16)
        w = w.astype(jnp.float32)
    else:
        pooled = jnp.mean(feat, axis=(1, 2))
        w = w_embed.astype(jnp.float32)
    emb = jnp.dot(pooled, w, precision=jax.lax.Precision.HIGHEST) + b_embed
    mean = jnp.mean(emb, axis=0, keepdims=True)
    var = jnp.mean((emb - mean) ** 2, axis=0, keepdims=True)
    return (emb - mean) / jnp.sqrt(var + BN_EPS) * gamma + beta


# --------------------------------------------------------------------------
# Test
# --------------------------------------------------------------------------
if __name__ == "__main__":
    # Small shapes consistent with the forward: the backbone's pre-pool feature
    # map [B, H, W, C_feat] (channels-last; C_feat stands in for 2048), embed E.
    B, H, W, C_FEAT = 16, 4, 4, 256
    EMBED_SIZE = 32

    key = jax.random.PRNGKey(0)
    k_feat, k_w, k_b, k_g, k_be = jax.random.split(key, 5)

    # Kernel input contract: channels-last bf16 feature map (what a TPU-native
    # conv backbone hands over); the same tensor feeds kernel and reference.
    feat = jax.random.normal(k_feat, (B, H, W, C_FEAT),
                             dtype=jnp.float32).astype(jnp.bfloat16)

    bound = 1.0 / jnp.sqrt(jnp.float32(C_FEAT))
    w_embed = jax.random.uniform(k_w, (C_FEAT, EMBED_SIZE),
                                 minval=-bound, maxval=bound, dtype=jnp.float32)
    b_embed = jax.random.uniform(k_b, (EMBED_SIZE,),
                                 minval=-bound, maxval=bound, dtype=jnp.float32)
    gamma = jnp.ones((EMBED_SIZE,), jnp.float32) \
        + 0.01 * jax.random.normal(k_g, (EMBED_SIZE,), dtype=jnp.float32)
    beta = 0.01 * jax.random.normal(k_be, (EMBED_SIZE,), dtype=jnp.float32)

    # tile_b=8, tile_c=128 -> 2x2 grid even at toy shapes: exercises the
    # "parallel" batch axis and the init/accumulate path of the reduction axis.
    out = encoder_cnn_forward(feat, w_embed, b_embed, gamma, beta,
                              tile_b=8, tile_c=128)
    out = jax.block_until_ready(out)
    assert out.shape == (B, EMBED_SIZE)

    # Correctness gate: reference mirroring the kernel's bf16 Linear operands.
    ref_q = reference_forward(feat, w_embed, b_embed, gamma, beta,
                              match_kernel_quantization=True)
    assert jnp.allclose(out, ref_q, atol=2e-3, rtol=2e-3), \
        "mismatch vs quantization-matched reference"

    # Sanity bound vs the exact f32 reference (drift from bf16 Linear operands
    # only; BN's small batch std amplifies it at these toy shapes).
    ref = reference_forward(feat, w_embed, b_embed, gamma, beta)
    assert jnp.allclose(out, ref, atol=6e-2, rtol=6e-2), \
        "excessive drift vs f32 reference"

    print("KERNEL_OK")
</pallas_src>

<mosaic_0001>
module attributes {stable_mosaic.version = 11 : i64} {
  func.func @pool_embed_kernel(%arg0: i32, %arg1: i32, %arg2: memref<8x16x128xbf16, #tpu.memory_space<vmem>>, %arg3: memref<128x128xbf16, #tpu.memory_space<vmem>>, %arg4: memref<8x128xf32, #tpu.memory_space<vmem>>) attributes {dimension_semantics = [#tpu.dimension_semantics<parallel>, #tpu.dimension_semantics<arbitrary>], iteration_bounds = array<i64: 2, 2>, scalar_prefetch = 0 : i64, scratch_operands = 0 : i64, tpu.core_type = #tpu.core_type<tc>, window_params = [{transform_indices = @transform_0, window_bounds = array<i64: 8, 16, 128>}, {transform_indices = @transform_1, window_bounds = array<i64: 128, 128>}, {transform_indices = @transform_2, window_bounds = array<i64: 8, 128>}]} {
    %c0_i32 = arith.constant 0 : i32
    %0 = arith.cmpi eq, %arg1, %c0_i32 : i32
    %1 = arith.extui %0 : i1 to i32
    %c0_i32_0 = arith.constant 0 : i32
    %2 = arith.cmpi ne, %1, %c0_i32_0 : i32
    scf.if %2 {
      %cst_10 = arith.constant 0.000000e+00 : f32
      %12 = vector.broadcast %cst_10 : f32 to vector<8x128xf32>
      %c0_11 = arith.constant 0 : index
      %c0_12 = arith.constant 0 : index
      %13 = vector.load %arg4[%c0_11, %c0_12] : memref<8x128xf32, #tpu.memory_space<vmem>>, vector<8x128xf32>
      tpu.vector_store %arg4[%c0_11, %c0_12], %12 {strides = array<i32>} : memref<8x128xf32, #tpu.memory_space<vmem>>, vector<8x128xf32>,
    } else {
    }
    %c0 = arith.constant 0 : index
    %c0_1 = arith.constant 0 : index
    %c0_2 = arith.constant 0 : index
    %3 = vector.load %arg2[%c0, %c0_1, %c0_2] : memref<8x16x128xbf16, #tpu.memory_space<vmem>>, vector<8x16x128xbf16>
    %4 = arith.extf %3 : vector<8x16x128xbf16> to vector<8x16x128xf32>
    %cst = arith.constant dense<0.000000e+00> : vector<8x128xf32>
    %5 = vector.multi_reduction <add>, %4, %cst [1] : vector<8x16x128xf32> to vector<8x128xf32>
    %c0_3 = arith.constant 0 : index
    %c0_4 = arith.constant 0 : index
    %6 = vector.load %arg4[%c0_3, %c0_4] : memref<8x128xf32, #tpu.memory_space<vmem>>, vector<8x128xf32>
    %7 = arith.truncf %5 : vector<8x128xf32> to vector<8x128xbf16>
    %c0_5 = arith.constant 0 : index
    %c0_6 = arith.constant 0 : index
    %8 = vector.load %arg3[%c0_5, %c0_6] : memref<128x128xbf16, #tpu.memory_space<vmem>>, vector<128x128xbf16>
    %cst_7 = arith.constant dense<0.000000e+00> : vector<8x128xf32>
    %9 = tpu.matmul %7, %8, %cst_7 {dimension_numbers = #tpu.dot_dimension_numbers<[1], [0], [0], [1], [0, 0, 1, 1], [], []>} : vector<8x128xbf16>, vector<128x128xbf16>, vector<8x128xf32> -> vector<8x128xf32>
    %10 = arith.addf %6, %9 : vector<8x128xf32>
    %c0_8 = arith.constant 0 : index
    %c0_9 = arith.constant 0 : index
    %11 = vector.load %arg4[%c0_8, %c0_9] : memref<8x128xf32, #tpu.memory_space<vmem>>, vector<8x128xf32>
    tpu.vector_store %arg4[%c0_8, %c0_9], %10 {strides = array<i32>} : memref<8x128xf32, #tpu.memory_space<vmem>>, vector<8x128xf32>,
    return
  }
  func.func @transform_0(%arg0: i32, %arg1: i32) -> (i32, i32, i32) {
    %c0_i32 = arith.constant 0 : i32
    %c0_i32_0 = arith.constant 0 : i32
    return %arg0, %c0_i32, %arg1 : i32, i32, i32
  }
  func.func @transform_1(%arg0: i32, %arg1: i32) -> (i32, i32) {
    %c0_i32 = arith.constant 0 : i32
    %c0_i32_0 = arith.constant 0 : i32
    return %arg1, %c0_i32 : i32, i32
  }
  func.func @transform_2(%arg0: i32, %arg1: i32) -> (i32, i32) {
    %c0_i32 = arith.constant 0 : i32
    %c0_i32_0 = arith.constant 0 : i32
    return %arg0, %c0_i32 : i32, i32
  }
}

</mosaic_0001>

<bundles_post_ra>
// kernel: tpu_custom_call.1
= control target key start
LH: loop header
LB: loop body
LE: loop exit
PB: predicated region body
PF: predicated region fallthrough
CT: control target
= control target key end

     0   :  { %s1440_s0 = inlined_call_operand.hbm [shape: bf16[16,16,256], index: 0, kind: input, shape index: {}]   ;;  %s1441_s1 = inlined_call_operand.hbm [shape: bf16[256,128], index: 1, kind: input, shape index: {}]   ;;  %s1442_s2 = inlined_call_operand.hbm [shape: f32[16,128], index: 2, kind: output, shape index: {}]  }
   0x1   :  { %1454 = sst [smem:[#allocation16_spill]] %s1440_s0 }
   0x2   :  { %1455 = sst [smem:[#allocation17_spill]] %s1441_s1 }
   0x3   :  { %1456 = sst [smem:[#allocation18_spill]] %s1442_s2 }
   0x4   :  { %7 = vsyncpa [#allocation3], 0 }
   0x5   :  { %9 = vsyncpa [#allocation3 + $0x1], 0 }
   0x6   :  { %10 = vsyncpa [#allocation6], 0 }
   0x7   :  { %12 = vsyncpa [#allocation6 + $0x1], 0 }
   0x8   :  { %13 = vsyncpa [#allocation4], 0 }
   0x9   :  { %15 = vsyncpa [#allocation4 + $0x1], 0  ;;  %s1060_s9 = smov 0   ;;  %s1062_s10 = smov 0  }
   0xa   :  { %s1064_s11 = smov 0   ;;  %s1066_s12 = smov 0  }
   0xb   :  { %s1068_s13 = smov 0   ;;  %s1070_s14 = smov 0  }
   0xc   :  { %s1072_s15 = smov 0   ;;  %s1074_s16 = smov 0  }
   0xd   :  { %s1076_s17 = smov 0   ;;  %s1078_s18 = smov 0  }
   0xe   :  { %s1080_s19 = smov 0   ;;  %s1082_s20 = smov 0  }
   0xf   :  { %s1084_s21 = smov 0   ;;  %s1086_s22 = smov 0  }
  0x10 LB: > { %1457 = sst [smem:[#allocation11_spill]] %s982_s9  ;;  %s30_s23 = sadd.s32 1, %s1026_s20  ;;  %s1034_s22 = sphi %s1086_s22, %s21_s22   ;;  %s1030_s21 = sphi %s1084_s21, %s1503_s21   ;;  %s1026_s20 = sphi %s1082_s20, %s1502_s20   ;;  %s1022_s19 = sphi %s1080_s19, %s1501_s19   ;;  %s1018_s18 = sphi %s1078_s18, %s1500_s18   ;;  %s1014_s17 = sphi %s1076_s17, %s1499_s17   ;;  %s1010_s16 = sphi %s1074_s16, %s1498_s16   ;;  %s1006_s15 = sphi %s1072_s15, %s1497_s15   ;;  %s1002_s14 = sphi %s1070_s14, %s1496_s14   ;;  %s998_s13 = sphi %s1068_s13, %s1495_s13   ;;  %s994_s12 = sphi %s1066_s12, %s1494_s12   ;;  %s990_s11 = sphi %s1064_s11, %s1493_s11   ;;  %s986_s10 = sphi %s1062_s10, %s1492_s10   ;;  %s982_s9 = sphi %s1060_s9, %s1491_s9  }
  0x11   : > { %1458 = sst [smem:[#allocation12_spill]] %s1018_s18  ;;  %s33_s24 = sadd.s32 1, %s1030_s21 }
  0x12   : > { %1459 = sst [smem:[#allocation13_spill]] %s1022_s19  ;;  %p31_p0 = scmp.ge.s32.totalorder %s30_s23, 2 }
  0x13   : > { %s42_s25 = sadd.s32 1, %s1014_s17  ;;  %p49_p1 = scmp.ne.s32.totalorder %s1014_s17, %s1010_s16 }
  0x14   : > { %p1447_p2 = scmp.eq.s32.totalorder %s1034_s22, 0  ;;  %s1505_s23 = smov (%p31_p0, %s30_s23), 0 }
  0x15   : > { %1460 = sst [smem:[#allocation14_spill]] %s1505_s23  ;;  %s1507_s24 = smov (!%p31_p0, %s33_s24), %s1030_s21 }
  0x16   : > { %s1141_s26 = ssub.s32 %s1026_s20, %s1505_s23  ;;  %p1145_p3 = por %p1447_p2, %p49_p1 }
  0x17   : > { %p35_p4 = scmp.ge.s32.totalorder %s1507_s24, 2  ;;  %s94_s28 = sadd.s32 1, %s990_s11 }
  0x18   : > { %p1446_p7 = scmp.lt.s32.totalorder %s1034_s22, 4  ;;  %s131_s30 = sand.u32 1, %s1014_s17  }
  0x19   : > { %s1509_s24 = smov (%p35_p4, %s1507_s24), 0  ;;  %s585_s6 = sshll.u32 %s131_s30, 6 }
  0x1a   : > { %1462 = sst [smem:[#allocation15_spill]] %s1509_s24  ;;  %s37_s29 = ssub.s32 %s1030_s21, %s1509_s24 }
  0x1b   : > { %s39_s3 = sor.u32 %s1141_s26, %s37_s29  ;;  %p92_p8 = scmp.eq.s32.totalorder %s37_s29, 0 }
  0x1c   : > { %p40_p9 = scmp.eq.s32.totalorder %s39_s3, 0  ;;  %s609_s7 = sshll.u32 %s1030_s21, 5 }
  0x1d   : > { %s1161_s4 = scalar_select %p92_p8, %s990_s11, %s94_s28  }
  0x1e   : > { %s1164_s5 = scalar_select %p40_p9, %s1014_s17, %s42_s25  }
  0x1f   : > { %s141_s8 = sadd.s32 %s1026_s20, %s609_s7  ;;  %s135_s2 = scalar_lea.vmem [#allocation2], %s585_s6 }
  0x20   : > { %s588_s23 = sshll.u32 %s141_s8, 6  ;;  %s144_s19 = sshll.u32 %s135_s2, 4  ;;  %s1173_s19 = int_to_ptr.vmem [resolvable:$true] %s144_s19 }
  0x21   : > { %s1463_s0 = sld [smem:[#allocation16_spill]]  ;;  %p1179_p10 = pnand %p1446_p7, %p1145_p3 }
  0x22   : > { %p592_p11 = scmp.ge.s32.totalorder %s1034_s22, 1  ;;  %s1184_s2 = scalar_lea.sflag [#allocation3], %s131_s30 }
  0x23   : > { %p826_p13 = pneg %p1179_p10 }
  0x27   : > { %s1171_s9 = scalar_lea.hbm %s1463_s0, %s588_s23  ;;  %s829_s27 = scalar_lea.hbm %s1463_s0, 4096 }
  0x28   : > { %s824_s1 = scalar_lea.hbm %s1171_s9, 1024  ;;  %p830_p3 = scmp.lt.u32.totalorder %s1171_s9, %s1463_s0 }
  0x29   : > { %p825_p12 = scmp.ne.s32.totalorder %s1171_s9, %s824_s1  ;;  %p831_p4 = scmp.lt.u32.totalorder %s829_s27, %s824_s1 }
  0x2a   : > { %p833_p9 = scmp.lt.u32.totalorder %s824_s1, %s1171_s9 }
  0x2b   : > { %p827_p0 = pnand %p826_p13, %p825_p12  ;;  %p832_p8 = por %p831_p4, %p830_p3 }
  0x2d   : > { %p828_p1 = pneg %p827_p0  ;;  %p834_p7 = por %p833_p9, %p832_p8 }
  0x2f   : > { %p835_p2 = pnand %p834_p7, %p828_p1 }
  0x31   : > { %838 = shalt.err (!%p835_p2)
}
  0x32   : > { %s839_s30 = scalar_lea.vmem %s1173_s19, 1024  ;;  %s1036_s3 = smov [#allocation2]  }
  0x33   : > { %p840_p12 = scmp.ne.s32.totalorder %s1173_s19, %s839_s30  ;;  %s844_s6 = sshll.u32 %s1036_s3, 4  ;;  %s845_s6 = int_to_ptr.vmem [resolvable:$false] %s844_s6 }
  0x34   : > { %s846_s7 = scalar_lea.vmem %s845_s6, 2048  ;;  %p847_p6 = scmp.lt.s32.totalorder %s1173_s19, %s845_s6 }
  0x35   : > { %p842_p0 = pnand %p840_p12, %p826_p13  ;;  %p848_p3 = scmp.lt.s32.totalorder %s846_s7, %s839_s30 }
  0x37   : > { %p843_p5 = pneg %p842_p0  ;;  %p849_p4 = por %p848_p3, %p847_p6 }
  0x39   : > { %p850_p8 = pnand %p849_p4, %p843_p5 }
  0x3b   : > { %853 = shalt.err (!%p850_p8)
}
  0x3c   : > { %s1037_s8 = smov 128   ;;  %s1448_s1 = smov 64  }
  0x3d   : > { %s1449_s18 = smov 4   ;;  %s1465_s23 = sld [smem:[#allocation11_spill]] }
  0x3e   : > { %688 = dma.hbm_to_vmem [thread:$0]  (!%p1179_p10), %s1171_s9, 1024, %s1173_s19, %s1184_s2, %s1037_s8, %s1448_s1, %s1449_s18  }
  0x3f   : > { %p173_p2 = scmp.lt.s32.totalorder %s1034_s22, 5  ;;  %s581_s28 = sadd.s32 4294967295, %s1034_s22  }
  0x40   : > { %s582_s29 = sadd.s32 4294967294, %s1034_s22   ;;  %p56_p6 = scmp.eq.s32.totalorder %s581_s28, 0 }
  0x41   : > { %p1217_p5 = pnand %p592_p11, %p173_p2  ;;  %s68_s30 = sadd.s32 1, %s1002_s14 }
  0x42   : > { %p1467_p7 = scmp.eq.s32.totalorder %s1141_s26, 0  ;;  %p1468_p13 = scmp.ne.s32.totalorder %s1010_s16, %s1006_s15 }
  0x43   : > { %p75_p10 = scmp.ne.s32.totalorder %s1002_s14, %s998_s13  ;;  %p81_p11 = scmp.ne.s32.totalorder %s998_s13, %s994_s12 }
  0x44   : > { %s1227_s3 = scalar_select %p1467_p7, %s1002_s14, %s68_s30  }
  0x45   : > { %p1232_p1 = por %p56_p6, %p1468_p13  ;;  %p104_p9 = scmp.ne.s32.totalorder %s990_s11, %s986_s10 }
  0x46   : > { %p1470_p12 = scmp.eq.s32.totalorder %s1034_s22, 0  ;;  %p105_p3 = scmp.eq.s32.totalorder %s581_s28, 3 }
  0x47   : > { %s1469_s25 = scalar_select %p1232_p1, 1, 0 }
  0x48   : > { %p77_p0 = por %p75_p10, %p1470_p12  ;;  %p1244_p4 = por %p81_p11, %p56_p6 }
  0x49   : > { %p110_p8 = scmp.ne.s32.totalorder %s986_s10, %s1465_s23  ;;  %p1250_p2 = por %p105_p3, %p104_p9 }
  0x4a   : > { %s1471_s9 = scalar_select %p1244_p4, 1, 0 }
  0x4b   : > { %s1472_s19 = scalar_select %p1250_p2, 1, 0 }
  0x4c   : > { %p111_p7 = scmp.eq.s32.totalorder %s582_s29, 3  ;;  %s154_s15 = sand.u32 1, %s1002_s14  }
  0x4d   : > { %s610_s26 = sshll.u32 %s1026_s20, 10  ;;  %s589_s12 = sshll.u32 %s154_s15, 6 }
  0x4e   : > { %p1256_p13 = por %p111_p7, %p110_p8  ;;  %s1474_s8 = sld [smem:[#allocation17_spill]] }
  0x4f   : > { %p1475_p6 = scmp.lt.s32.totalorder %s1034_s22, 4  ;;  %s158_s29 = scalar_lea.vmem [#allocation5], %s589_s12 }
  0x50   : > { %s1473_s2 = scalar_select %p1256_p13, 1, 0 }
  0x51   : > { %p1267_p10 = pnand %p1475_p6, %p77_p0  ;;  %s165_s30 = sshll.u32 %s158_s29, 4  ;;  %s1271_s30 = int_to_ptr.vmem [resolvable:$true] %s165_s30 }
  0x52   : > { %s1273_s1 = scalar_lea.sflag [#allocation6], %s154_s15 }
  0x53   : > { %p856_p9 = pneg %p1267_p10 }
  0x54   : > { %s1263_s28 = scalar_lea.hbm %s1474_s8, %s610_s26  ;;  %s859_s18 = scalar_lea.hbm %s1474_s8, 2048 }
  0x55   : > { %s854_s6 = scalar_lea.hbm %s1263_s28, 1024  ;;  %p860_p0 = scmp.lt.u32.totalorder %s1263_s28, %s1474_s8 }
  0x56   : > { %p855_p11 = scmp.ne.s32.totalorder %s1263_s28, %s854_s6  ;;  %p861_p8 = scmp.lt.u32.totalorder %s859_s18, %s854_s6 }
  0x57   : > { %p863_p6 = scmp.lt.u32.totalorder %s854_s6, %s1263_s28 }
  0x58   : > { %p857_p12 = pnand %p856_p9, %p855_p11  ;;  %p862_p7 = por %p861_p8, %p860_p0 }
  0x5a   : > { %p858_p3 = pneg %p857_p12  ;;  %p864_p13 = por %p863_p6, %p862_p7 }
  0x5c   : > { %p865_p2 = pnand %p864_p13, %p858_p3 }
  0x5e   : > { %868 = shalt.err (!%p865_p2)
}
  0x5f   : > { %s869_s15 = scalar_lea.vmem %s1271_s30, 1024  ;;  %s1040_s12 = smov [#allocation5]  }
  0x60   : > { %p870_p11 = scmp.ne.s32.totalorder %s1271_s30, %s869_s15  ;;  %s874_s29 = sshll.u32 %s1040_s12, 4  ;;  %s875_s29 = int_to_ptr.vmem [resolvable:$false] %s874_s29 }
  0x61   : > { %s876_s0 = scalar_lea.vmem %s875_s29, 2048  ;;  %p877_p1 = scmp.lt.s32.totalorder %s1271_s30, %s875_s29 }
  0x62   : > { %p872_p12 = pnand %p870_p11, %p856_p9  ;;  %p878_p0 = scmp.lt.s32.totalorder %s876_s0, %s869_s15 }
  0x64   : > { %p873_p4 = pneg %p872_p12  ;;  %p879_p8 = por %p878_p0, %p877_p1 }
  0x66   : > { %p880_p7 = pnand %p879_p8, %p873_p4 }
  0x68   : > { %883 = shalt.err (!%p880_p7)
}
  0x69   : > { %s1477_s24 = smov 4   ;;  %s1478_s18 = smov 64  }
  0x6a   : > { %691 = dma.hbm_to_vmem [thread:$0]  (!%p1267_p10), %s1263_s28, 1024, %s1271_s30, %s1273_s1, %s1478_s18, %s1478_s18, %s1477_s24  }
  0x6b   : > { %177 = sbr.rel (%p1217_p5) target bundleno = 395 (0x18b), region = 28  ;;  %s179_s6 = sand.u32 (!%p1217_p5), 1, %s1010_s16  }
  0x6c   : > { %s593_s26 = sshll.u32 (!%p1217_p5), %s179_s6, 6  ;;  %s180_s7 = scalar_lea.sflag (!%p1217_p5), [#allocation3], %s179_s6 }
  0x6d   : > { %s1307_s15 = scalar_lea.vmem (!%p1217_p5), [#allocation2], %s593_s26  ;;  %p1479_p1 = scmp.ne.s32.totalorder (!%p1217_p5), %s1469_s25, 0 }
  0x72   : > { %969 = dma.done.wait (%p1479_p1), %s180_s7, 1024  }
  0x73   : > { %971 = vsyncadd (%p1479_p1), %s180_s7, 4294966272  ;;  %s188_s23 = sand.u32 1, %s998_s13   ;;  %p1480_p5 = scmp.ne.s32.totalorder %s1471_s9, 0 }
  0x74   : > { %s594_s12 = sshll.u32 %s188_s23, 6  ;;  %s189_s1 = scalar_lea.sflag [#allocation6], %s188_s23 }
  0x75   : > { %s1314_s28 = scalar_lea.vmem [#allocation5], %s594_s12 }
  0x76   : > { %973 = dma.done.wait (%p1480_p5), %s189_s1, 1024  }
  0x77   : > { %975 = vsyncadd (%p1480_p5), %s189_s1, 4294966272  ;;  %s215_s27 = sand.u32 1, %s986_s10   ;;  %s1481_s25 = sld [smem:[#allocation12_spill]] }
  0x78   : > { %s595_s30 = sshll.u32 %s215_s27, 3 }
  0x79   : > { %s1323_s29 = scalar_lea.vmem [#allocation7], %s595_s30 }
  0x7d   : > { %p596_p4 = scmp.ne.s32.totalorder %s1481_s25, 0 }
  0x7e   : > { %v1041_v0 = vmov (!%p596_p4), 0.0  }
  0x7f   : > { %224 = sbr.rel (%p596_p4) target bundleno = 134 (0x86), region = 40  ;;  %225 = vst [vmem:[%s1323_s29] sm:$0xff] (!%p596_p4), %v1041_v0 }
  0x86 PF: > { %v816_v1 = vld [vmem:[%s1314_s28] sm:$0xff]   ;;  %v1042_v2 = vmov 0.0   ;;  %v817_v3 = vld [vmem:[%s1314_s28 + $0x8] sm:$0xff]   ;;  %vm1043_vm0 = vmmov 0   ;;  %v818_v4 = vld [vmem:[%s1314_s28 + $0x10] sm:$0xff]   ;;  %vm355_vm1 = vcmask 1041409  }
  0x87   : > { %659 = vmatprep.subr.bf16.mxu0 %v1042_v2  ;;  %675 = vmatprep.mubr.msk.bf16.mxu0 %vm1043_vm0, %v1042_v2  ;;  %v612_v5 = vld [vmem:[%s1307_s15] sm:$0xff]   ;;  %v643_v6 = vld [vmem:[%s1307_s15 + $0x8] sm:$0xff]   ;;  %v644_v7 = vld [vmem:[%s1307_s15 + $0x10] sm:$0xff]   ;;  %vm357_vm2 = vcmask 1042434   ;;  %vm359_vm3 = vcmask 1043459   ;;  %s1482_s9 = sld [smem:[#allocation13_spill]] }
  0x88   : > { %660 = vmatpush3.bf16.msra.mxu0 %v816_v1  ;;  %v613_v8 = vunpack.c.l.bf16 %v612_v5  ;;  %v614_v9 = vunpack.c.h.bf16 %v612_v5  ;;  %v617_v10 = vunpack.c.l.bf16 %v643_v6  ;;  %v618_v11 = vunpack.c.h.bf16 %v643_v6  ;;  %v645_v12 = vld [vmem:[%s1307_s15 + $0x18] sm:$0xff]   ;;  %v646_v13 = vld [vmem:[%s1307_s15 + $0x20] sm:$0xff]   ;;  %v647_v14 = vld [vmem:[%s1307_s15 + $0x28] sm:$0xff]   ;;  %s475_s24 = sshll.u32 %s1323_s29, 4  ;;  %s1483_s26 = sld [smem:[#allocation18_spill]]  ;;  %s1362_s24 = int_to_ptr.vmem [resolvable:$true] %s475_s24 }
  0x89   : > { %661 = vmatprep.subr.bf16.mxu0 %v1042_v2  ;;  %v819_v15 = vld [vmem:[%s1314_s28 + $0x18] sm:$0xff]   ;;  %v621_v16 = vunpack.c.l.bf16 %v644_v7  ;;  %v622_v17 = vunpack.c.h.bf16 %v644_v7  ;;  %v625_v18 = vunpack.c.l.bf16 %v645_v12  ;;  %v626_v19 = vunpack.c.h.bf16 %v645_v12  ;;  %v648_v20 = vld [vmem:[%s1307_s15 + $0x30] sm:$0xff]   ;;  %v820_v34 = vld [vmem:[%s1314_s28 + $0x20] sm:$0xff]   ;;  %s884_s23 = scalar_lea.vmem %s1362_s24, 128  ;;  %p1484_p13 = scmp.ne.s32.totalorder %s1472_s19, 0 }
  0x8a   : > { %v649_v21 = vld [vmem:[%s1307_s15 + $0x38] sm:$0xff]   ;;  %v629_v22 = vunpack.c.l.bf16 %v646_v13  ;;  %v630_v23 = vunpack.c.h.bf16 %v646_v13  ;;  %v633_v24 = vunpack.c.l.bf16 %v647_v14  ;;  %v634_v25 = vunpack.c.h.bf16 %v647_v14  ;;  %v821_v51 = vld [vmem:[%s1314_s28 + $0x28] sm:$0xff]   ;;  %v822_v5 = vld [vmem:[%s1314_s28 + $0x30] sm:$0xff]   ;;  %s462_s15 = scalar_lea.sflag [#allocation4], %s215_s27  ;;  %p885_p2 = scmp.ne.s32.totalorder %s1362_s24, %s884_s23 }
  0x8b   : > { %v637_v26 = vunpack.c.l.bf16 %v648_v20  ;;  %v638_v27 = vunpack.c.h.bf16 %v648_v20  ;;  %v641_v28 = vunpack.c.l.bf16 %v649_v21  ;;  %v642_v29 = vunpack.c.h.bf16 %v649_v21  ;;  %s1044_s12 = smov [#allocation7]  }
  0x8c   : > { %662 = vmatpush3.bf16.msra.mxu0 %v817_v3  ;;  %v258_v30 = vadd.f32 %v614_v9, %v613_v8  ;;  %v265_v31 = vadd.f32 %v618_v11, %v617_v10  ;;  %v272_v32 = vadd.f32 %v622_v17, %v621_v16  ;;  %v279_v33 = vadd.f32 %v626_v19, %v625_v18  ;;  %p886_p10 = pnand %p885_p2, %p1484_p13  ;;  %s888_s1 = sshll.u32 %s1044_s12, 4  ;;  %s889_s1 = int_to_ptr.vmem [resolvable:$false] %s888_s1 }
  0x8d   : > { %663 = vmatprep.subr.bf16.mxu0 %v1042_v2  ;;  %v286_v35 = vadd.f32 %v630_v23, %v629_v22  ;;  %v293_v36 = vadd.f32 %v634_v25, %v633_v24  ;;  %v300_v37 = vadd.f32 %v638_v27, %v637_v26  ;;  %v307_v38 = vadd.f32 %v642_v29, %v641_v28  ;;  %v823_v22 = vld [vmem:[%s1314_s28 + $0x38] sm:$0xff]   ;;  %s606_s0 = sshll.u32 %s1482_s9, 7  ;;  %s890_s28 = scalar_lea.vmem %s889_s1, 256 }
  0x8e   : > { %v259_v39 = vrot.slane %v258_v30, 4  ;;  %v266_v40 = vrot.slane %v265_v31, 4  ;;  %v273_v41 = vrot.slane %v272_v32, 4  ;;  %v280_v42 = vrot.slane %v279_v33, 4  ;;  %s1360_s7 = scalar_lea.hbm %s1483_s26, %s606_s0  ;;  %p887_p9 = pneg %p886_p10 }
  0x8f   : > { %v287_v43 = vrot.slane %v286_v35, 4  ;;  %v294_v44 = vrot.slane %v293_v36, 4  ;;  %v301_v45 = vrot.slane %v300_v37, 4  ;;  %v308_v46 = vrot.slane %v307_v38, 4  ;;  %p891_p3 = scmp.lt.s32.totalorder %s1362_s24, %s889_s1  ;;  %p892_p6 = scmp.lt.s32.totalorder %s890_s28, %s884_s23 }
  0x90   : > { %664 = vmatpush3.bf16.msra.mxu0 %v818_v4  ;;  %v260_v47 = vadd.f32 %v259_v39, %v258_v30  ;;  %v267_v48 = vadd.f32 %v266_v40, %v265_v31  ;;  %v274_v49 = vadd.f32 %v273_v41, %v272_v32  ;;  %v281_v50 = vadd.f32 %v280_v42, %v279_v33 }
  0x91   : > { %665 = vmatprep.subr.bf16.mxu0 %v1042_v2  ;;  %v288_v52 = vadd.f32 %v287_v43, %v286_v35  ;;  %v295_v53 = vadd.f32 %v294_v44, %v293_v36  ;;  %v302_v54 = vadd.f32 %v301_v45, %v300_v37  ;;  %v309_v55 = vadd.f32 %v308_v46, %v307_v38  ;;  %p893_p11 = por %p892_p6, %p891_p3 }
  0x92   : > { %v261_v56 = vrot.slane %v260_v47, 2  ;;  %v268_v57 = vrot.slane %v267_v48, 2  ;;  %v275_v58 = vrot.slane %v274_v49, 2  ;;  %v282_v59 = vrot.slane %v281_v50, 2 }
  0x93   : > { %v289_v60 = vrot.slane %v288_v52, 2  ;;  %v296_v61 = vrot.slane %v295_v53, 2  ;;  %v303_v62 = vrot.slane %v302_v54, 2  ;;  %v310_v63 = vrot.slane %v309_v55, 2  ;;  %p894_p12 = pnand %p893_p11, %p887_p9 }
  0x94   : > { %666 = vmatpush3.bf16.msra.mxu0 %v819_v15  ;;  %v262_v0 = vadd.f32 %v261_v56, %v260_v47  ;;  %v269_v1 = vadd.f32 %v268_v57, %v267_v48  ;;  %v276_v3 = vadd.f32 %v275_v58, %v274_v49  ;;  %v283_v4 = vadd.f32 %v282_v59, %v281_v50  ;;  %v314_v50 = vld [vmem:[%s1323_s29] sm:$0xff] }
  0x95   : > { %667 = vmatprep.subr.bf16.mxu0 %v1042_v2  ;;  %v290_v6 = vadd.f32 %v289_v60, %v288_v52  ;;  %v297_v7 = vadd.f32 %v296_v61, %v295_v53  ;;  %v304_v8 = vadd.f32 %v303_v62, %v302_v54  ;;  %v311_v9 = vadd.f32 %v310_v63, %v309_v55 }
  0x96   : > { %v263_v10 = vrot.slane %v262_v0, 1  ;;  %v270_v11 = vrot.slane %v269_v1, 1  ;;  %v277_v12 = vrot.slane %v276_v3, 1  ;;  %v284_v13 = vrot.slane %v283_v4, 1 }
  0x97   : > { %v291_v14 = vrot.slane %v290_v6, 1  ;;  %v298_v15 = vrot.slane %v297_v7, 1  ;;  %v305_v16 = vrot.slane %v304_v8, 1  ;;  %v312_v17 = vrot.slane %v311_v9, 1 }
  0x98   : > { %668 = vmatpush3.bf16.msra.mxu0 %v820_v34  ;;  %v264_v18 = vadd.f32 %v263_v10, %v262_v0  ;;  %v271_v19 = vadd.f32 %v270_v11, %v269_v1  ;;  %v278_v20 = vadd.f32 %v277_v12, %v276_v3  ;;  %v285_v21 = vadd.f32 %v284_v13, %v283_v4 }
  0x99   : > { %669 = vmatprep.subr.bf16.mxu0 %v1042_v2  ;;  %v292_v23 = vadd.f32 %v291_v14, %v290_v6  ;;  %v299_v24 = vadd.f32 %v298_v15, %v297_v7  ;;  %v306_v25 = vadd.f32 %v305_v16, %v304_v8  ;;  %v313_v26 = vadd.f32 %v312_v17, %v311_v9 }
  0x9a   : > { %v315_v27 = vpack.c.bf16 %v264_v18, %v264_v18  ;;  %v316_v28 = vpack.c.bf16 %v271_v19, %v271_v19  ;;  %v317_v29 = vpack.c.bf16 %v278_v20, %v278_v20  ;;  %v318_v30 = vpack.c.bf16 %v285_v21, %v285_v21 }
  0x9b   : > { %v319_v31 = vpack.c.bf16 %v292_v23, %v292_v23  ;;  %v320_v32 = vpack.c.bf16 %v299_v24, %v299_v24  ;;  %v321_v33 = vpack.c.bf16 %v306_v25, %v306_v25  ;;  %v322_v34 = vpack.c.bf16 %v313_v26, %v313_v26 }
  0x9c   : > { %670 = vmatpush3.bf16.msra.mxu0 %v821_v51  ;;  %v347_v35 = vunpack.c.l.b16 %v315_v27  ;;  %v348_v36 = vunpack.c.l.b16 %v316_v28  ;;  %v349_v37 = vunpack.c.l.b16 %v317_v29  ;;  %v350_v38 = vunpack.c.l.b16 %v318_v30 }
  0x9d   : > { %671 = vmatprep.subr.bf16.mxu0 %v1042_v2  ;;  %v351_v39 = vunpack.c.l.b16 %v319_v31  ;;  %v352_v40 = vunpack.c.l.b16 %v320_v32  ;;  %vm361_vm4 = vcmask 1044484   ;;  %vm363_vm5 = vcmask 1045509  }
  0x9e   : > { %v356_v41 = vsel %vm355_vm1, %v348_v36, %v347_v35  ;;  %v354_v43 = vunpack.c.l.b16 %v322_v34  ;;  %vm365_vm6 = vcmask 1046534   ;;  %vm367_vm7 = vcmask 1047559  }
  0x9f   : > { %v358_v42 = vsel %vm357_vm2, %v349_v37, %v356_v41 }
  0xa0   : > { %672 = vmatpush3.bf16.msra.mxu0 %v822_v5  ;;  %v360_v44 = vsel %vm359_vm3, %v350_v38, %v358_v42 }
  0xa1   : > { %673 = vmatprep.subr.bf16.mxu0 %v1042_v2  ;;  %v353_v2 = vunpack.c.l.b16 %v321_v33  ;;  %v362_v45 = vsel %vm361_vm4, %v351_v39, %v360_v44 }
  0xa2   : > { %v364_v46 = vsel %vm363_vm5, %v352_v40, %v362_v45 }
  0xa3   : > { %v366_v47 = vsel %vm365_vm6, %v353_v2, %v364_v46 }
  0xa4   : > { %674 = vmatpush3.bf16.msra.mxu0 %v823_v22  ;;  %v368_v48 = vsel %vm367_vm7, %v354_v43, %v366_v47 }
  0xa5   : > { %v369_v49 = vpack.c.b16 %v368_v48, %v368_v48 }
  0xa7   : > { %676 = vmatmul.mubr.bf16.vlgmr.msra.gmra.mrb[0].mxu0 %v369_v49 }
 0x17a   : > { %v453_v51 = vpop.f32.mrb[0].mxu0 }
 0x17b   : > { %v459_v52 = vadd.f32 %v453_v51, %v314_v50  ;;  %v677_v53 = vpop.f32.mrb[1].mxu0 }
 0x17c   : > { %v456_v54 = vpop.f32.mrb[2].mxu0 }
 0x17d   : > { %460 = vst [vmem:[%s1323_s29] sm:$0xff] %v459_v52  ;;  %v678_v55 = vpop.f32.mrb[3].mxu0 }
 0x17e   : > { %897 = shalt.err (!%p894_p12)
}
 0x17f   : > { %s898_s27 = scalar_lea.hbm %s1360_s7, 128  ;;  %s902_s25 = scalar_lea.hbm %s1483_s26, 256 }
 0x180   : > { %p899_p0 = scmp.ne.s32.totalorder %s1360_s7, %s898_s27  ;;  %p903_p1 = scmp.lt.u32.totalorder %s1360_s7, %s1483_s26 }
 0x181   : > { %p904_p5 = scmp.lt.u32.totalorder %s902_s25, %s898_s27  ;;  %p906_p2 = scmp.lt.u32.totalorder %s898_s27, %s1360_s7 }
 0x182   : > { %p900_p8 = pnand %p899_p0, %p1484_p13 }
 0x183   : > { %p905_p4 = por %p904_p5, %p903_p1 }
 0x184   : > { %p901_p7 = pneg %p900_p8 }
 0x185   : > { %p907_p10 = por %p906_p2, %p905_p4 }
 0x187   : > { %p908_p9 = pnand %p907_p10, %p901_p7 }
 0x189   : > { %911 = shalt.err (!%p908_p9)
}
 0x18a   : > { %683 = dma.vmem_to_hbm [thread:$0]  (%p1484_p13), %s1362_s24, 128, %s1360_s7, %s462_s15  }
 0x18b PF: > { %s1485_s18 = sld [smem:[#allocation11_spill]]  ;;  %p697_p3 = scmp.ge.s32.totalorder %s1034_s22, 2 }
 0x18c   : > { %p1486_p6 = scmp.ne.s32.totalorder %s1473_s2, 0 }
 0x18e   : > { %p693_p11 = pnand %p697_p3, %p1486_p6 }
 0x191   : > { %s487_s6 = sand.u32 1, %s1485_s18  }
 0x192   : > { %s488_s23 = scalar_lea.sflag [#allocation4], %s487_s6 }
 0x193   : > { %977 = dma.done.wait (!%p693_p11), %s488_s23, 128  }
 0x194   : > { %979 = vsyncadd (!%p693_p11), %s488_s23, 4294967168  ;;  %s21_s22 = sadd.s32 1, %s1034_s22   ;;  %s1488_s2 = sld [smem:[#allocation14_spill]] }
 0x195   : > { %p1393_p12 = scmp.ge.s32.totalorder %s21_s22, 6   ;;  %s1489_s24 = sld [smem:[#allocation15_spill]] }
 0x196   : > { %s1491_s9 = smov %s986_s10  ;;  %s1492_s10 = smov %s990_s11 }
 0x197   : > { %s1493_s11 = smov %s1161_s4  ;;  %s1494_s12 = smov %s998_s13 }
 0x198   : > { %s1495_s13 = smov %s1002_s14  ;;  %s1496_s14 = smov %s1227_s3 }
 0x199   : > { %s1497_s15 = smov %s1010_s16  ;;  %s1498_s16 = smov %s1014_s17 }
 0x19a   : > { %s1499_s17 = smov %s1164_s5  ;;  %s1500_s18 = smov %s1026_s20 }
 0x19b   : > { %s1501_s19 = smov %s1030_s21  ;;  %s1502_s20 = smov %s1488_s2 }
 0x19c   : > { %s1503_s21 = smov %s1489_s24  ;;  %20 = sbr.rel (!%p1393_p12) target bundleno = 16 (0x10), region = 90 }
 0x1a3   :  { %493 = vsyncpa [#allocation3], 1 }
 0x1a4   :  { %495 = vsyncpa [#allocation3 + $0x1], 1 }
 0x1a5   :  { %496 = vsyncpa [#allocation6], 1 }
 0x1a6   :  { %498 = vsyncpa [#allocation6 + $0x1], 1 }
 0x1a7   :  { %499 = vsyncpa [#allocation4], 1 }
 0x1a8   :  { %501 = vsyncpa [#allocation4 + $0x1], 1 }

</bundles_post_ra>
